<compile_context>
chip_gen: v7x
topology: tpu7x:2x2x1
jax: 0.10.0
libtpu: 0.0.40
codegen_flags: <defaults>
</compile_context>

<pallas_src>
import numpy as np
import jax
import jax.numpy as jnp
from jax.experimental import pallas as pl
from jax.experimental.pallas import tpu as pltpu


_LANE = 128
_SUBLANE = 8


def _round_up(x, m):
    return ((int(x) + m - 1) // m) * m


def _vmem_budget_bytes():
    """Conservative per-TensorCore VMEM budget.  Falls back to the smallest
    generation (v7x: 64 MiB per core) when the hardware query is unavailable,
    so the chosen tile is safe on every generation."""
    cap = 64 * 1024 * 1024
    try:
        cap = int(pltpu.get_tpu_info().vmem_capacity_bytes)
    except Exception:
        pass
    cap = min(cap, 128 * 1024 * 1024)
    return (cap * 3) // 4          # leave headroom for compiler scratch


def _make_fused_head_kernel(num_layers, compute_dtype):
    """h = cast(x); for l < L-1: h = cast(relu(h @ W_l + b_l), bf16);
    out = h @ W_last + b_last   (z_pred: no ReLU)."""

    def kernel(*refs):
        x_ref = refs[0]
        o_ref = refs[-1]
        wb = refs[1:-1]
        # Cast the tile in-kernel: x travels over HBM once, in its native f32.
        h = x_ref[...].astype(compute_dtype)
        for li in range(num_layers):
            w = wb[2 * li][...]                    # (d_in_l, d_out_l_pad) bf16
            b = wb[2 * li + 1][...]                # (1, d_out_l_pad) f32
            acc = jnp.dot(h, w, preferred_element_type=jnp.float32) + b
            if li < num_layers - 1:
                # ReLU on fc layers; bf16 between layers (MXU-native operand).
                h = jnp.maximum(acc, 0.0).astype(compute_dtype)
            else:
                h = acc                            # final z_pred stays f32
        o_ref[...] = h.astype(o_ref.dtype)

    return kernel


def prepare_head_params(layer_params, compute_dtype=jnp.bfloat16):
    """One-time prep: cast weights to the MXU compute dtype and zero-pad every
    output (lane) dimension up to a multiple of 128 so all matmuls and the
    output store are lane-dense.  Exact: padded units are relu(0 + 0) = 0."""
    ws, bs = [], []
    rows = int(layer_params[0][0].shape[0])        # true d_in of layer 0
    for (w, b) in layer_params:
        d_in_l, d_out_l = int(w.shape[0]), int(w.shape[1])
        d_out_pad = _round_up(d_out_l, _LANE)
        w_p = jnp.zeros((rows, d_out_pad), compute_dtype)
        w_p = w_p.at[:d_in_l, :d_out_l].set(w.astype(compute_dtype))
        b_p = jnp.zeros((1, d_out_pad), jnp.float32)
        b_p = b_p.at[0, :d_out_l].set(b.astype(jnp.float32))
        ws.append(w_p)
        bs.append(b_p)
        rows = d_out_pad
    return ws, bs


def _choose_tile_n(n, d_in, x_itemsize, d_out_pad, out_itemsize,
                   param_bytes, max_tile_n, vmem_budget):
    """Largest row tile that fits the VMEM budget, preferring >= 2 grid steps
    so the 'parallel' axis can feed both TensorCores on v7x."""
    per_row = (2 * d_in * x_itemsize      # double-buffered x block (f32)
               + 2 * d_in                 # in-kernel bf16 copy of the x tile
               + 2 * d_out_pad * out_itemsize   # double-buffered output block
               + 8 * d_out_pad)           # hidden-activation temporaries
    fixed = 2 * param_bytes + (2 << 20)   # double-buffered params + slack
    cap = max(_SUBLANE, (vmem_budget - fixed) // max(per_row, 1))
    cap = min(int(cap), int(max_tile_n))
    cap = max(_SUBLANE, (cap // _SUBLANE) * _SUBLANE)
    min_blocks = 2 if n > _SUBLANE else 1
    tile_n = min(cap, _round_up(-(-n // min_blocks), _SUBLANE))
    return max(_SUBLANE, tile_n)


def fused_fc_head(x_flat, padded_weights, padded_biases, *, out_dim,
                  out_dtype=jnp.float32, compute_dtype=jnp.bfloat16,
                  max_tile_n=1024):
    """Fused MLP head.

    x_flat:         (N, d_in) float array (passed through unmodified; cast to
                    bf16 happens inside the kernel).
    padded_weights: list of (d_in_l, d_out_l_pad) arrays in compute_dtype.
    padded_biases:  list of (1, d_out_l_pad) float32 arrays.
    Every layer except the last gets a ReLU (last = z_pred).
    Returns (N, out_dim) in out_dtype.
    """
    n, d_in = int(x_flat.shape[0]), int(x_flat.shape[1])
    num_layers = len(padded_weights)
    d_out_pad = int(padded_weights[-1].shape[1])
    out_itemsize = jnp.dtype(out_dtype).itemsize

    param_bytes = sum(int(a.size) * a.dtype.itemsize
                      for a in (*padded_weights, *padded_biases))
    vmem_budget = _vmem_budget_bytes()
    tile_n = _choose_tile_n(n, d_in, x_flat.dtype.itemsize, d_out_pad,
                            out_itemsize, param_bytes, max_tile_n, vmem_budget)
    grid = (int(pl.cdiv(n, tile_n)),)

    flat_args = [x_flat]
    in_specs = [pl.BlockSpec((tile_n, d_in), lambda i: (i, 0))]
    for w, b in zip(padded_weights, padded_biases):
        flat_args += [w, b]
        # Constant index maps -> params fetched once, stay resident in VMEM.
        in_specs += [pl.BlockSpec(w.shape, lambda i: (0, 0)),
                     pl.BlockSpec(b.shape, lambda i: (0, 0))]

    # Advisory cost estimate for XLA's scheduler.
    flops = 0
    d_prev = d_in
    for w in padded_weights:
        flops += 2 * n * d_prev * int(w.shape[1])
        d_prev = int(w.shape[1])
    bytes_accessed = int(n * d_in * x_flat.dtype.itemsize + param_bytes
                         + n * d_out_pad * out_itemsize)

    out = pl.pallas_call(
        _make_fused_head_kernel(num_layers, compute_dtype),
        out_shape=jax.ShapeDtypeStruct((n, d_out_pad), out_dtype),
        grid=grid,
        in_specs=in_specs,
        out_specs=pl.BlockSpec((tile_n, d_out_pad), lambda i: (i, 0)),
        compiler_params=pltpu.CompilerParams(
            dimension_semantics=("parallel",),
            vmem_limit_bytes=int(vmem_budget)),
        cost_estimate=pl.CostEstimate(
            flops=flops, transcendentals=0, bytes_accessed=bytes_accessed),
    )(*flat_args)
    # Drop the lane padding; rows are already exactly N (ragged block handled
    # by Pallas, no wrapper-side pad pass over x).
    return out[:, :out_dim]


class FastRCNNFCHeadPallas:
    """JAX/Pallas port of FastRCNNFCHead: num_fc x (Linear+ReLU) then z_pred,
    all fused into one Pallas kernel."""

    def __init__(self, key, input_shape, num_fc=2, fc_dim=32,
                 cls_agnostic=False, num_classes=9,
                 compute_dtype=jnp.bfloat16, out_dtype=jnp.float32):
        in_dim = int(np.prod(input_shape))
        self.layer_params = []
        for _ in range(num_fc):
            key, kw = jax.random.split(key)
            # c2_xavier_fill: uniform(-bound, bound), bound = sqrt(3 / fan_in)
            bound = float(np.sqrt(3.0 / in_dim))
            w_t = jax.random.uniform(kw, (in_dim, fc_dim), jnp.float32,
                                     minval=-bound, maxval=bound)
            b = jnp.zeros((fc_dim,), jnp.float32)
            self.layer_params.append((w_t, b))
            in_dim = fc_dim
        num_z_reg_classes = 1 if cls_agnostic else num_classes
        key, kz = jax.random.split(key)
        zw = 0.001 * jax.random.normal(kz, (fc_dim, num_z_reg_classes),
                                       jnp.float32)
        zb = jnp.zeros((num_z_reg_classes,), jnp.float32)
        self.layer_params.append((zw, zb))   # final layer: z_pred (no ReLU)

        self.num_out = num_z_reg_classes
        self.compute_dtype = compute_dtype
        # out_dtype can be set to bf16 if downstream accepts it (halves the
        # already-small output writeback); default f32 matches PyTorch.
        self.out_dtype = out_dtype
        # One-time bf16 cast + 128-lane zero-padding of all layer params.
        self.padded_w, self.padded_b = prepare_head_params(
            self.layer_params, compute_dtype)

    def __call__(self, x):
        # x: (N, C, H, W) -> (N, C*H*W), matching x.view(N, -1); contiguous
        # reshape is free (no HBM pass).
        n = x.shape[0]
        x = x.reshape(n, -1)
        return fused_fc_head(x, self.padded_w, self.padded_b,
                             out_dim=self.num_out,
                             out_dtype=self.out_dtype,
                             compute_dtype=self.compute_dtype)


if __name__ == "__main__":
    key = jax.random.PRNGKey(0)
    key, kx, kp = jax.random.split(key, 3)

    # Small shapes consistent with the module: NCHW ROI features.
    N, C, H, W = 2, 4, 16, 16
    x = jax.random.normal(kx, (N, C, H, W), jnp.float32)

    head = FastRCNNFCHeadPallas(kp, input_shape=(C, H, W),
                                num_fc=2, fc_dim=32,
                                cls_agnostic=False, num_classes=9)

    out = jax.block_until_ready(head(x))
    assert out.shape == (N, 9), out.shape

    L = len(head.layer_params)

    # Reference 1: same mixed precision as the kernel (bf16 operands and
    # inter-layer activations, f32 accumulation, f32 bias).
    ref = x.reshape(N, -1)
    for li, (w, b) in enumerate(head.layer_params):
        ref = jnp.dot(ref.astype(jnp.bfloat16), w.astype(jnp.bfloat16),
                      preferred_element_type=jnp.float32) + b
        if li < L - 1:
            ref = jnp.maximum(ref, 0.0)
    np.testing.assert_allclose(np.asarray(out), np.asarray(ref),
                               rtol=5e-4, atol=5e-4)

    # Reference 2: full-f32 math (sanity that bf16 operands stay close).
    ref32 = x.reshape(N, -1)
    for li, (w, b) in enumerate(head.layer_params):
        ref32 = ref32 @ w + b
        if li < L - 1:
            ref32 = jnp.maximum(ref32, 0.0)
    np.testing.assert_allclose(np.asarray(out), np.asarray(ref32),
                               rtol=2e-2, atol=1e-2)

    print("KERNEL_OK")
</pallas_src>

<mosaic_0001>
module attributes {stable_mosaic.version = 11 : i64} {
  func.func @kernel(%arg0: i32, %arg1: memref<8x1024xf32, #tpu.memory_space<vmem>>, %arg2: memref<1024x128xbf16, #tpu.memory_space<vmem>>, %arg3: memref<1x128xf32, #tpu.memory_space<vmem>>, %arg4: memref<128x128xbf16, #tpu.memory_space<vmem>>, %arg5: memref<1x128xf32, #tpu.memory_space<vmem>>, %arg6: memref<128x128xbf16, #tpu.memory_space<vmem>>, %arg7: memref<1x128xf32, #tpu.memory_space<vmem>>, %arg8: memref<8x128xf32, #tpu.memory_space<vmem>>) attributes {dimension_semantics = [#tpu.dimension_semantics<parallel>], iteration_bounds = array<i64: 1>, scalar_prefetch = 0 : i64, scratch_operands = 0 : i64, tpu.core_type = #tpu.core_type<tc>, window_params = [{transform_indices = @transform_0, window_bounds = array<i64: 8, 1024>}, {pipeline_mode = #tpu.pipeline_mode<synchronous>, transform_indices = @transform_1, window_bounds = array<i64: 1024, 128>}, {pipeline_mode = #tpu.pipeline_mode<synchronous>, transform_indices = @transform_2, window_bounds = array<i64: 1, 128>}, {pipeline_mode = #tpu.pipeline_mode<synchronous>, transform_indices = @transform_3, window_bounds = array<i64: 128, 128>}, {pipeline_mode = #tpu.pipeline_mode<synchronous>, transform_indices = @transform_4, window_bounds = array<i64: 1, 128>}, {pipeline_mode = #tpu.pipeline_mode<synchronous>, transform_indices = @transform_5, window_bounds = array<i64: 128, 128>}, {pipeline_mode = #tpu.pipeline_mode<synchronous>, transform_indices = @transform_6, window_bounds = array<i64: 1, 128>}, {transform_indices = @transform_7, window_bounds = array<i64: 8, 128>}]} {
    %c0 = arith.constant 0 : index
    %c0_0 = arith.constant 0 : index
    %0 = vector.load %arg1[%c0, %c0_0] : memref<8x1024xf32, #tpu.memory_space<vmem>>, vector<8x1024xf32>
    %1 = arith.truncf %0 : vector<8x1024xf32> to vector<8x1024xbf16>
    %c0_1 = arith.constant 0 : index
    %c0_2 = arith.constant 0 : index
    %2 = vector.load %arg2[%c0_1, %c0_2] : memref<1024x128xbf16, #tpu.memory_space<vmem>>, vector<1024x128xbf16>
    %c0_3 = arith.constant 0 : index
    %c0_4 = arith.constant 0 : index
    %3 = vector.load %arg3[%c0_3, %c0_4] : memref<1x128xf32, #tpu.memory_space<vmem>>, vector<1x128xf32>
    %cst = arith.constant dense<0.000000e+00> : vector<8x128xf32>
    %4 = tpu.matmul %1, %2, %cst {dimension_numbers = #tpu.dot_dimension_numbers<[1], [0], [0], [1], [0, 0, 1, 1], [], []>} : vector<8x1024xbf16>, vector<1024x128xbf16>, vector<8x128xf32> -> vector<8x128xf32>
    %5 = vector.broadcast %3 : vector<1x128xf32> to vector<8x128xf32>
    %6 = arith.addf %4, %5 : vector<8x128xf32>
    %cst_5 = arith.constant 0.000000e+00 : f32
    %7 = vector.broadcast %cst_5 : f32 to vector<8x128xf32>
    %8 = arith.maximumf %6, %7 : vector<8x128xf32>
    %9 = arith.truncf %8 : vector<8x128xf32> to vector<8x128xbf16>
    %c0_6 = arith.constant 0 : index
    %c0_7 = arith.constant 0 : index
    %10 = vector.load %arg4[%c0_6, %c0_7] : memref<128x128xbf16, #tpu.memory_space<vmem>>, vector<128x128xbf16>
    %c0_8 = arith.constant 0 : index
    %c0_9 = arith.constant 0 : index
    %11 = vector.load %arg5[%c0_8, %c0_9] : memref<1x128xf32, #tpu.memory_space<vmem>>, vector<1x128xf32>
    %cst_10 = arith.constant dense<0.000000e+00> : vector<8x128xf32>
    %12 = tpu.matmul %9, %10, %cst_10 {dimension_numbers = #tpu.dot_dimension_numbers<[1], [0], [0], [1], [0, 0, 1, 1], [], []>} : vector<8x128xbf16>, vector<128x128xbf16>, vector<8x128xf32> -> vector<8x128xf32>
    %13 = vector.broadcast %11 : vector<1x128xf32> to vector<8x128xf32>
    %14 = arith.addf %12, %13 : vector<8x128xf32>
    %cst_11 = arith.constant 0.000000e+00 : f32
    %15 = vector.broadcast %cst_11 : f32 to vector<8x128xf32>
    %16 = arith.maximumf %14, %15 : vector<8x128xf32>
    %17 = arith.truncf %16 : vector<8x128xf32> to vector<8x128xbf16>
    %c0_12 = arith.constant 0 : index
    %c0_13 = arith.constant 0 : index
    %18 = vector.load %arg6[%c0_12, %c0_13] : memref<128x128xbf16, #tpu.memory_space<vmem>>, vector<128x128xbf16>
    %c0_14 = arith.constant 0 : index
    %c0_15 = arith.constant 0 : index
    %19 = vector.load %arg7[%c0_14, %c0_15] : memref<1x128xf32, #tpu.memory_space<vmem>>, vector<1x128xf32>
    %cst_16 = arith.constant dense<0.000000e+00> : vector<8x128xf32>
    %20 = tpu.matmul %17, %18, %cst_16 {dimension_numbers = #tpu.dot_dimension_numbers<[1], [0], [0], [1], [0, 0, 1, 1], [], []>} : vector<8x128xbf16>, vector<128x128xbf16>, vector<8x128xf32> -> vector<8x128xf32>
    %21 = vector.broadcast %19 : vector<1x128xf32> to vector<8x128xf32>
    %22 = arith.addf %20, %21 : vector<8x128xf32>
    %c0_17 = arith.constant 0 : index
    %c0_18 = arith.constant 0 : index
    %23 = vector.load %arg8[%c0_17, %c0_18] : memref<8x128xf32, #tpu.memory_space<vmem>>, vector<8x128xf32>
    tpu.vector_store %arg8[%c0_17, %c0_18], %22 {strides = array<i32>} : memref<8x128xf32, #tpu.memory_space<vmem>>, vector<8x128xf32>,
    return
  }
  func.func @transform_0(%arg0: i32) -> (i32, i32) {
    %c0_i32 = arith.constant 0 : i32
    %c0_i32_0 = arith.constant 0 : i32
    return %arg0, %c0_i32 : i32, i32
  }
  func.func @transform_1(%arg0: i32) -> (i32, i32) {
    %c0_i32 = arith.constant 0 : i32
    %c0_i32_0 = arith.constant 0 : i32
    %c0_i32_1 = arith.constant 0 : i32
    return %c0_i32, %c0_i32_0 : i32, i32
  }
  func.func @transform_2(%arg0: i32) -> (i32, i32) {
    %c0_i32 = arith.constant 0 : i32
    %c0_i32_0 = arith.constant 0 : i32
    %c0_i32_1 = arith.constant 0 : i32
    return %c0_i32, %c0_i32_0 : i32, i32
  }
  func.func @transform_3(%arg0: i32) -> (i32, i32) {
    %c0_i32 = arith.constant 0 : i32
    %c0_i32_0 = arith.constant 0 : i32
    %c0_i32_1 = arith.constant 0 : i32
    return %c0_i32, %c0_i32_0 : i32, i32
  }
  func.func @transform_4(%arg0: i32) -> (i32, i32) {
    %c0_i32 = arith.constant 0 : i32
    %c0_i32_0 = arith.constant 0 : i32
    %c0_i32_1 = arith.constant 0 : i32
    return %c0_i32, %c0_i32_0 : i32, i32
  }
  func.func @transform_5(%arg0: i32) -> (i32, i32) {
    %c0_i32 = arith.constant 0 : i32
    %c0_i32_0 = arith.constant 0 : i32
    %c0_i32_1 = arith.constant 0 : i32
    return %c0_i32, %c0_i32_0 : i32, i32
  }
  func.func @transform_6(%arg0: i32) -> (i32, i32) {
    %c0_i32 = arith.constant 0 : i32
    %c0_i32_0 = arith.constant 0 : i32
    %c0_i32_1 = arith.constant 0 : i32
    return %c0_i32, %c0_i32_0 : i32, i32
  }
  func.func @transform_7(%arg0: i32) -> (i32, i32) {
    %c0_i32 = arith.constant 0 : i32
    %c0_i32_0 = arith.constant 0 : i32
    return %arg0, %c0_i32 : i32, i32
  }
}

</mosaic_0001>

<bundles_post_ra>
// kernel: tpu_custom_call.1
= control target key start
LH: loop header
LB: loop body
LE: loop exit
PB: predicated region body
PF: predicated region fallthrough
CT: control target
= control target key end

     0   :  { %12 = vsyncpa [#allocation3], 0  ;;  %s1732_s0 = inlined_call_operand.hbm [shape: f32[2,1024], index: 0, kind: input, shape index: {}]   ;;  %s1733_s1 = inlined_call_operand.hbm [shape: bf16[1024,128], index: 1, kind: input, shape index: {}]   ;;  %s1734_s2 = inlined_call_operand.vmem [shape: f32[1,128], index: 2, kind: input, shape index: {}]   ;;  %s1735_s3 = inlined_call_operand.hbm [shape: bf16[128,128], index: 3, kind: input, shape index: {}]   ;;  %s1736_s4 = inlined_call_operand.vmem [shape: f32[1,128], index: 4, kind: input, shape index: {}]   ;;  %s1737_s5 = inlined_call_operand.hbm [shape: bf16[128,128], index: 5, kind: input, shape index: {}]   ;;  %s1738_s6 = inlined_call_operand.vmem [shape: f32[1,128], index: 6, kind: input, shape index: {}]   ;;  %s1739_s7 = inlined_call_operand.hbm [shape: f32[2,128], index: 7, kind: output, shape index: {}]  }
   0x1   :  { %13 = vsyncpa [#allocation6], 0 }
   0x2   :  { %14 = vsyncpa [#allocation9], 0 }
   0x3   :  { %15 = vsyncpa [#allocation4], 0 }
   0x4   :  { %20 = vsyncadd [#allocation3], 768  ;;  %s1565_s24 = smov [#allocation5]   ;;  %s1447_s28 = scalar_lea.hbm %s1733_s1, 8192 }
   0x5   :  { %s33_s25 = sshll.u32 %s1565_s24, 4  ;;  %p1448_p0 = scmp.ne.s32.totalorder %s1733_s1, %s1447_s28  ;;  %s34_s25 = int_to_ptr.vmem [resolvable:$true] %s33_s25 }
   0x6   :  { %p1451_p1 = scmp.lt.u32.totalorder %s1447_s28, %s1733_s1 }
   0x8   :  { %p1453_p2 = pnand %p1451_p1, %p1448_p0 }
   0xa   :  { %1456 = shalt.err (!%p1453_p2)
}
   0xb   :  { %s1457_s10 = scalar_lea.vmem %s34_s25, 8192  ;;  %p1462_p4 = scmp.lt.s32.totalorder %s34_s25, %s34_s25 }
   0xc   :  { %p1458_p3 = scmp.ne.s32.totalorder %s34_s25, %s1457_s10  ;;  %p1463_p5 = scmp.lt.s32.totalorder %s1457_s10, %s1457_s10 }
   0xe   :  { %p1464_p6 = por %p1463_p5, %p1462_p4 }
  0x10   :  { %p1465_p7 = pnand %p1464_p6, %p1458_p3 }
  0x12   :  { %1468 = shalt.err (!%p1465_p7)
}
  0x13   :  { %s1566_s11 = smov 64   ;;  %s1567_s12 = smov 4  }
  0x14   :  { %39 = dma.hbm_to_vmem [thread:$0]  %s1733_s1, 8192, %s34_s25, [#allocation6], %s1566_s11, %s1566_s11, %s1567_s12  }
  0x15   :  { %s1568_s15 = smov [#allocation2]   ;;  %s1469_s19 = scalar_lea.hbm %s1732_s0, 256 }
  0x16   :  { %s21_s16 = sshll.u32 %s1568_s15, 4  ;;  %p1470_p8 = scmp.ne.s32.totalorder %s1732_s0, %s1469_s19  ;;  %s22_s16 = int_to_ptr.vmem [resolvable:$true] %s21_s16 }
  0x17   :  { %p1473_p9 = scmp.lt.u32.totalorder %s1469_s19, %s1732_s0 }
  0x19   :  { %p1475_p10 = pnand %p1473_p9, %p1470_p8 }
  0x1b   :  { %1478 = shalt.err (!%p1475_p10)
}
  0x1c   :  { %s1479_s24 = scalar_lea.vmem %s22_s16, 256  ;;  %s1483_s1 = scalar_lea.vmem %s22_s16, 1024 }
  0x1d   :  { %p1480_p11 = scmp.ne.s32.totalorder %s22_s16, %s1479_s24  ;;  %p1484_p12 = scmp.lt.s32.totalorder %s22_s16, %s22_s16 }
  0x1e   :  { %p1485_p13 = scmp.lt.s32.totalorder %s1483_s1, %s1479_s24 }
  0x20   :  { %p1486_p0 = por %p1485_p13, %p1484_p12 }
  0x22   :  { %p1487_p1 = pnand %p1486_p0, %p1480_p11 }
  0x24   :  { %1490 = shalt.err (!%p1487_p1)
}
  0x25   :  { %s1569_s25 = smov 256   ;;  %s1570_s26 = smov 16  }
  0x26   :  { %27 = dma.hbm_to_vmem [thread:$0]  %s1732_s0, 256, %s22_s16, [#allocation3], %s1569_s25, %s1569_s25, %s1570_s26  }
  0x27   :  { %s1571_s29 = smov [#allocation7]   ;;  %s1572_s8 = smov [#allocation8]  }
  0x28   :  { %s47_s30 = sshll.u32 %s1571_s29, 4  ;;  %s61_s9 = sshll.u32 %s1572_s8, 4  ;;  %s48_s30 = int_to_ptr.vmem [resolvable:$true] %s47_s30  ;;  %s1646_s9 = int_to_ptr.vmem [resolvable:$true] %s61_s9 }
  0x29   :  { %s1491_s14 = scalar_lea.hbm %s1735_s3, 1024 }
  0x2a   :  { %p1492_p2 = scmp.ne.s32.totalorder %s1735_s3, %s1491_s14  ;;  %p1495_p3 = scmp.lt.u32.totalorder %s1491_s14, %s1735_s3 }
  0x2c   :  { %p1497_p4 = pnand %p1495_p3, %p1492_p2 }
  0x2e   :  { %1500 = shalt.err (!%p1497_p4)
}
  0x2f   :  { %s1501_s0 = scalar_lea.vmem %s48_s30, 1024  ;;  %p1506_p6 = scmp.lt.s32.totalorder %s48_s30, %s48_s30 }
  0x30   :  { %p1502_p5 = scmp.ne.s32.totalorder %s48_s30, %s1501_s0  ;;  %p1507_p7 = scmp.lt.s32.totalorder %s1501_s0, %s1501_s0 }
  0x32   :  { %p1508_p8 = por %p1507_p7, %p1506_p6 }
  0x34   :  { %p1509_p9 = pnand %p1508_p8, %p1502_p5 }
  0x36   :  { %1512 = shalt.err (!%p1509_p9)
}
  0x37   :  { %53 = dma.hbm_to_vmem [thread:$0]  %s1735_s3, 1024, %s48_s30, [#allocation6], %s1566_s11, %s1566_s11, %s1567_s12  }
  0x38   :  { %s1513_s23 = scalar_lea.hbm %s1737_s5, 1024 }
  0x39   :  { %p1514_p10 = scmp.ne.s32.totalorder %s1737_s5, %s1513_s23  ;;  %p1517_p11 = scmp.lt.u32.totalorder %s1513_s23, %s1737_s5 }
  0x3b   :  { %p1519_p12 = pnand %p1517_p11, %p1514_p10 }
  0x3d   :  { %1522 = shalt.err (!%p1519_p12)
}
  0x3e   :  { %s1523_s27 = scalar_lea.vmem %s1646_s9, 1024  ;;  %p1528_p0 = scmp.lt.s32.totalorder %s1646_s9, %s1646_s9 }
  0x3f   :  { %p1524_p13 = scmp.ne.s32.totalorder %s1646_s9, %s1523_s27  ;;  %p1529_p1 = scmp.lt.s32.totalorder %s1523_s27, %s1523_s27 }
  0x41   :  { %p1530_p2 = por %p1529_p1, %p1528_p0 }
  0x43   :  { %p1531_p3 = pnand %p1530_p2, %p1524_p13 }
  0x45   :  { %1534 = shalt.err (!%p1531_p3)
}
  0x46   :  { %67 = dma.hbm_to_vmem [thread:$0]  %s1737_s5, 1024, %s1646_s9, [#allocation9], %s1566_s11, %s1566_s11, %s1567_s12  }
  0x47   :  { %1557 = dma.done.wait [#allocation3], 1024  }
  0x48   :  { %1558 = vsyncadd [#allocation3], 4294966272 }
  0x49   :  { %1559 = dma.done.wait [#allocation6], 9216  }
  0x4a   :  { %1560 = vsyncadd [#allocation6], 4294958080 }
  0x4b   :  { %1561 = dma.done.wait [#allocation9], 1024  }
  0x4c   :  { %1562 = vsyncadd [#allocation9], 4294966272  ;;  %v1355_v0 = vld [vmem:[#allocation5 + $0x40] sm:$0xff]   ;;  %v1359_v4 = vld [vmem:[#allocation5 + $0x48] sm:$0xff]   ;;  %v1573_v24 = vmov 1983009808   ;;  %v106_v26 = vlaneseq }
  0x4d   :  { %v1356_v1 = vld [vmem:[#allocation5 + $0xc0] sm:$0xff]   ;;  %1195 = vmatprep.subr.bf16.mxu0 %v1355_v0  ;;  %v1360_v5 = vld [vmem:[#allocation5 + $0xc8] sm:$0xff]   ;;  %v1363_v8 = vld [vmem:[#allocation5 + $0x50] sm:$0xff]   ;;  %v104_v25 = vunpack.c.l.s4 %v1573_v24  ;;  %vm1575_vm0 = vmmov 0  }
  0x4e   :  { %v1357_v2 = vld [vmem:[#allocation5] sm:$0xff]   ;;  %1217 = vmatprep.subr.bf16.mxu1 %v1356_v1  ;;  %v1361_v6 = vld [vmem:[#allocation5 + $0x8] sm:$0xff]   ;;  %v1364_v9 = vld [vmem:[#allocation5 + $0xd0] sm:$0xff]   ;;  %v107_v32 = vshrl.u32 %v106_v26, 7 }
  0x4f   :  { %v1358_v3 = vld [vmem:[#allocation5 + $0x80] sm:$0xff]   ;;  %1196 = vmatpush3.bf16.msra.mxu0 %v1357_v2  ;;  %v1362_v7 = vld [vmem:[#allocation5 + $0x88] sm:$0xff]   ;;  %v1365_v10 = vld [vmem:[#allocation5 + $0x10] sm:$0xff]   ;;  %v105_v31 = vunpack.c.0.s8 %v104_v25 }
  0x50   :  { %1218 = vmatpush3.bf16.msra.mxu1 %v1358_v3  ;;  %1197 = vmatprep.subr.bf16.mxu0 %v1359_v4  ;;  %v1366_v11 = vld [vmem:[#allocation5 + $0x90] sm:$0xff]   ;;  %v1367_v12 = vld [vmem:[#allocation5 + $0x58] sm:$0xff]   ;;  %v1371_v16 = vld [vmem:[#allocation5 + $0x60] sm:$0xff]  }
  0x51   :  { %1219 = vmatprep.subr.bf16.mxu1 %v1360_v5  ;;  %v1368_v13 = vld [vmem:[#allocation5 + $0xd8] sm:$0xff]   ;;  %v1372_v17 = vld [vmem:[#allocation5 + $0xe0] sm:$0xff]   ;;  %v1375_v20 = vld [vmem:[#allocation5 + $0x68] sm:$0xff]   ;;  %v1683_v37 = vsub.s32 %v105_v31, %v107_v32 }
  0x52   :  { %v1369_v14 = vld [vmem:[#allocation5 + $0x18] sm:$0xff]   ;;  %v1373_v18 = vld [vmem:[#allocation5 + $0x20] sm:$0xff]   ;;  %v1376_v21 = vld [vmem:[#allocation5 + $0xe8] sm:$0xff]  }
  0x53   :  { %1198 = vmatpush3.bf16.msra.mxu0 %v1361_v6  ;;  %v1370_v15 = vld [vmem:[#allocation5 + $0x98] sm:$0xff]   ;;  %v1374_v19 = vld [vmem:[#allocation5 + $0xa0] sm:$0xff]   ;;  %v1377_v22 = vld [vmem:[#allocation5 + $0x28] sm:$0xff]  }
  0x54   :  { %1220 = vmatpush3.bf16.msra.mxu1 %v1362_v7  ;;  %1199 = vmatprep.subr.bf16.mxu0 %v1363_v8  ;;  %v1378_v23 = vld [vmem:[#allocation5 + $0xa8] sm:$0xff]   ;;  %v1379_v27 = vld [vmem:[#allocation5 + $0x70] sm:$0xff]   ;;  %v1383_v33 = vld [vmem:[#allocation5 + $0x78] sm:$0xff]  }
  0x55   :  { %1221 = vmatprep.subr.bf16.mxu1 %v1364_v9  ;;  %v1380_v28 = vld [vmem:[#allocation5 + $0xf0] sm:$0xff]   ;;  %v1384_v34 = vld [vmem:[#allocation5 + $0xf8] sm:$0xff]   ;;  %v1393_v44 = vld [vmem:[#allocation5 + $0x140] sm:$0xff]  }
  0x56   :  { %v1381_v29 = vld [vmem:[#allocation5 + $0x30] sm:$0xff]   ;;  %v1385_v35 = vld [vmem:[#allocation5 + $0x38] sm:$0xff]   ;;  %v1394_v47 = vld [vmem:[#allocation5 + $0x1c0] sm:$0xff]  }
  0x57   :  { %1200 = vmatpush3.bf16.msra.mxu0 %v1365_v10  ;;  %v1382_v30 = vld [vmem:[#allocation5 + $0xb0] sm:$0xff]   ;;  %v1386_v36 = vld [vmem:[#allocation5 + $0xb8] sm:$0xff]   ;;  %v1395_v50 = vld [vmem:[#allocation5 + $0x100] sm:$0xff]  }
  0x58   :  { %1222 = vmatpush3.bf16.msra.mxu1 %v1366_v11  ;;  %1201 = vmatprep.subr.bf16.mxu0 %v1367_v12  ;;  %v1387_v38 = vld [vmem:[#allocation2] ss:$16 sps:$4 sm:$0xff]   ;;  %v1391_v40 = vld [vmem:[#allocation2 + $0x4] ss:$16 sps:$4 sm:$0xff]   ;;  %v1397_v56 = vld [vmem:[#allocation5 + $0x148] sm:$0xff]  }
  0x59   :  { %1223 = vmatprep.subr.bf16.mxu1 %v1368_v13  ;;  %v1389_v39 = vld [vmem:[#allocation2 + $0x20] ss:$16 sps:$4 sm:$0xff]   ;;  %v1392_v41 = vld [vmem:[#allocation2 + $0x24] ss:$16 sps:$4 sm:$0xff]   ;;  %v109_v42 = vrot.slane %v1387_v38, %v1683_v37  ;;  %v116_v45 = vrot.slane %v1391_v40, %v1683_v37  ;;  %v1398_v59 = vld [vmem:[#allocation5 + $0x1c8] sm:$0xff]   ;;  %v1574_v40 = vmov 0.0  }
  0x5a   :  { %v123_v43 = vrot.slane %v1389_v39, %v1683_v37  ;;  %v130_v46 = vrot.slane %v1392_v41, %v1683_v37  ;;  %v1396_v53 = vld [vmem:[#allocation5 + $0x180] sm:$0xff]   ;;  %v1399_v60 = vld [vmem:[#allocation5 + $0x108] sm:$0xff]   ;;  %v1401_v62 = vld [vmem:[#allocation5 + $0x150] sm:$0xff]  }
  0x5b   :  { %1202 = vmatpush3.bf16.msra.mxu0 %v1369_v14  ;;  %v1400_v61 = vld [vmem:[#allocation5 + $0x188] sm:$0xff]   ;;  %v1402_v63 = vld [vmem:[#allocation5 + $0x1d0] sm:$0xff]   ;;  %v1405_v2 = vld [vmem:[#allocation5 + $0x158] sm:$0xff]  }
  0x5c   :  { %1224 = vmatpush3.bf16.msra.mxu1 %v1370_v15  ;;  %1203 = vmatprep.subr.bf16.mxu0 %v1371_v16  ;;  %v132_v48 = vcombine.high %v109_v42, %v123_v43  ;;  %v131_v49 = vcombine.low %v109_v42, %v123_v43  ;;  %v134_v51 = vcombine.high %v116_v45, %v130_v46  ;;  %v1403_v0 = vld [vmem:[#allocation5 + $0x110] sm:$0xff]   ;;  %v1406_v3 = vld [vmem:[#allocation5 + $0x1d8] sm:$0xff]   ;;  %v1409_v6 = vld [vmem:[#allocation5 + $0x160] sm:$0xff]  }
  0x5d   :  { %1225 = vmatprep.subr.bf16.mxu1 %v1372_v17  ;;  %v133_v52 = vcombine.low %v116_v45, %v130_v46  ;;  %v1404_v1 = vld [vmem:[#allocation5 + $0x190] sm:$0xff]   ;;  %v1407_v4 = vld [vmem:[#allocation5 + $0x118] sm:$0xff]   ;;  %v1410_v7 = vld [vmem:[#allocation5 + $0x1e0] sm:$0xff]  }
  0x5e   :  { %v180_v54 = vpack.c.bf16 %v132_v48, %v132_v48  ;;  %v179_v55 = vpack.c.bf16 %v131_v49, %v131_v49  ;;  %v182_v57 = vpack.c.bf16 %v134_v51, %v134_v51  ;;  %v1408_v5 = vld [vmem:[#allocation5 + $0x198] sm:$0xff]   ;;  %v1411_v8 = vld [vmem:[#allocation5 + $0x120] sm:$0xff]   ;;  %v1413_v10 = vld [vmem:[#allocation5 + $0x168] sm:$0xff]  }
  0x5f   :  { %1204 = vmatpush3.bf16.msra.mxu0 %v1373_v18  ;;  %v181_v58 = vpack.c.bf16 %v133_v52, %v133_v52  ;;  %v1412_v9 = vld [vmem:[#allocation5 + $0x1a0] sm:$0xff]   ;;  %v1414_v11 = vld [vmem:[#allocation5 + $0x1e8] sm:$0xff]   ;;  %v1417_v14 = vld [vmem:[#allocation5 + $0x170] sm:$0xff]  }
  0x60   :  { %1226 = vmatpush3.bf16.msra.mxu1 %v1374_v19  ;;  %1205 = vmatprep.subr.bf16.mxu0 %v1375_v20  ;;  %v1415_v12 = vld [vmem:[#allocation5 + $0x128] sm:$0xff]   ;;  %v1418_v15 = vld [vmem:[#allocation5 + $0x1f0] sm:$0xff]   ;;  %v1421_v18 = vld [vmem:[#allocation5 + $0x178] sm:$0xff]  }
  0x61   :  { %1227 = vmatprep.subr.bf16.mxu1 %v1376_v21  ;;  %738 = vmatprep.mubr.bf16.mxu0 %v180_v54  ;;  %v1416_v13 = vld [vmem:[#allocation5 + $0x1a8] sm:$0xff]   ;;  %v1419_v16 = vld [vmem:[#allocation5 + $0x130] sm:$0xff]   ;;  %v1422_v19 = vld [vmem:[#allocation5 + $0x1f8] sm:$0xff]  }
  0x62   :  { %778 = vmatprep.mubr.bf16.mxu1 %v182_v57  ;;  %v1420_v17 = vld [vmem:[#allocation5 + $0x1b0] sm:$0xff]   ;;  %v1423_v20 = vld [vmem:[#allocation5 + $0x138] sm:$0xff]   ;;  %v1431_v39 = vld [vmem:[#allocation7] sm:$0xff]  }
  0x63   :  { %1206 = vmatpush3.bf16.msra.mxu0 %v1377_v22  ;;  %v1424_v21 = vld [vmem:[#allocation5 + $0x1b8] sm:$0xff]   ;;  %v1433_v41 = vld [vmem:[#allocation7 + $0x10] sm:$0xff]   ;;  %v1435_v43 = vld [vmem:[#allocation7 + $0x20] sm:$0xff]  }
  0x64   :  { %1228 = vmatpush3.bf16.msra.mxu1 %v1378_v23  ;;  %1207 = vmatprep.subr.bf16.mxu0 %v1379_v27  ;;  %v1425_v22 = vld [vmem:[#allocation2 + $0x8] ss:$16 sps:$4 sm:$0xff]   ;;  %v1429_v24 = vld [vmem:[#allocation2 + $0xc] ss:$16 sps:$4 sm:$0xff]   ;;  %v1437_v45 = vld [vmem:[#allocation7 + $0x30] sm:$0xff]  }
  0x65   :  { %1229 = vmatprep.subr.bf16.mxu1 %v1380_v28  ;;  %v1427_v23 = vld [vmem:[#allocation2 + $0x28] ss:$16 sps:$4 sm:$0xff]   ;;  %v1430_v25 = vld [vmem:[#allocation2 + $0x2c] ss:$16 sps:$4 sm:$0xff]   ;;  %v145_v26 = vrot.slane %v1425_v22, %v1683_v37  ;;  %v152_v28 = vrot.slane %v1429_v24, %v1683_v37  ;;  %v1441_v49 = vld [vmem:[#allocation8 + $0x10] sm:$0xff]  }
  0x66   :  { %v159_v27 = vrot.slane %v1427_v23, %v1683_v37  ;;  %v1434_v42 = vld [vmem:[#allocation7 + $0x18] sm:$0xff]   ;;  %v1440_v48 = vld [vmem:[#allocation8 + $0x8] sm:$0xff]   ;;  %v1443_v51 = vld [vmem:[#allocation8 + $0x20] sm:$0xff]  }
  0x67   :  { %1208 = vmatpush3.bf16.msra.mxu0 %v1381_v29  ;;  %v166_v29 = vrot.slane %v1430_v25, %v1683_v37  ;;  %v1432_v37 = vld [vmem:[#allocation7 + $0x8] sm:$0xff]   ;;  %v1438_v46 = vld [vmem:[#allocation7 + $0x38] sm:$0xff]  }
  0x68   :  { %1230 = vmatpush3.bf16.msra.mxu1 %v1382_v30  ;;  %1209 = vmatprep.subr.bf16.mxu0 %v1383_v33  ;;  %v168_v30 = vcombine.high %v145_v26, %v159_v27  ;;  %v167_v31 = vcombine.low %v145_v26, %v159_v27  ;;  %v1444_v52 = vld [vmem:[#allocation8 + $0x28] sm:$0xff]   ;;  %v1186_v26 = vld [vmem:[%s1738_s6] ss:$0 sm:$0xff] }
  0x69   :  { %1231 = vmatprep.subr.bf16.mxu1 %v1384_v34  ;;  %v170_v32 = vcombine.high %v152_v28, %v166_v29  ;;  %v169_v33 = vcombine.low %v152_v28, %v166_v29 }
  0x6a   :  { %v184_v34 = vpack.c.bf16 %v168_v30, %v168_v30 }
  0x6b   :  { %1210 = vmatpush3.bf16.msra.mxu0 %v1385_v35  ;;  %v183_v35 = vpack.c.bf16 %v167_v31, %v167_v31  ;;  %v185_v38 = vpack.c.bf16 %v169_v33, %v169_v33 }
  0x6c   :  { %1232 = vmatpush3.bf16.msra.mxu1 %v1386_v36  ;;  %1239 = vmatprep.subr.bf16.mxu0 %v1393_v44  ;;  %v186_v36 = vpack.c.bf16 %v170_v32, %v170_v32  ;;  %v1436_v44 = vld [vmem:[#allocation7 + $0x28] sm:$0xff]  }
  0x6d   :  { %1261 = vmatprep.subr.bf16.mxu1 %v1394_v47  ;;  %v1439_v47 = vld [vmem:[#allocation8] sm:$0xff]  }
  0x6e   :  { %739 = vmatmul.mubr.bf16.vlgmr.msra.gmra.mrb[0].mxu0 %v179_v55  ;;  %v1112_v55 = vld [vmem:[%s1734_s2] ss:$0 sm:$0xff] }
  0x6f   :  { %779 = vmatmul.mubr.bf16.vlgmr.msra.gmra.mrb[0].mxu1 %v181_v58  ;;  %1240 = vmatpush3.bf16.msra.mxu0 %v1395_v50  ;;  %v1442_v50 = vld [vmem:[#allocation8 + $0x18] sm:$0xff]  }
  0x70   :  { %1262 = vmatpush3.bf16.msra.mxu1 %v1396_v53  ;;  %1241 = vmatprep.subr.bf16.mxu0 %v1397_v56 }
  0x71   :  { %1263 = vmatprep.subr.bf16.mxu1 %v1398_v59  ;;  %818 = vmatprep.mubr.bf16.mxu0 %v184_v34 }
  0x72   :  { %858 = vmatprep.mubr.bf16.mxu1 %v186_v36 }
  0x73   :  { %1242 = vmatpush3.bf16.msra.mxu0 %v1399_v60 }
  0x74   :  { %1264 = vmatpush3.bf16.msra.mxu1 %v1400_v61  ;;  %1243 = vmatprep.subr.bf16.mxu0 %v1401_v62 }
  0x75   :  { %1265 = vmatprep.subr.bf16.mxu1 %v1402_v63 }
  0x77   :  { %1244 = vmatpush3.bf16.msra.mxu0 %v1403_v0 }
  0x78   :  { %1266 = vmatpush3.bf16.msra.mxu1 %v1404_v1  ;;  %1245 = vmatprep.subr.bf16.mxu0 %v1405_v2 }
  0x79   :  { %1267 = vmatprep.subr.bf16.mxu1 %v1406_v3 }
  0x7b   :  { %1246 = vmatpush3.bf16.msra.mxu0 %v1407_v4 }
  0x7c   :  { %1268 = vmatpush3.bf16.msra.mxu1 %v1408_v5  ;;  %1247 = vmatprep.subr.bf16.mxu0 %v1409_v6 }
  0x7d   :  { %1269 = vmatprep.subr.bf16.mxu1 %v1410_v7 }
  0x7f   :  { %1248 = vmatpush3.bf16.msra.mxu0 %v1411_v8 }
  0x80   :  { %1270 = vmatpush3.bf16.msra.mxu1 %v1412_v9  ;;  %1249 = vmatprep.subr.bf16.mxu0 %v1413_v10 }
  0x81   :  { %1271 = vmatprep.subr.bf16.mxu1 %v1414_v11 }
  0x83   :  { %1250 = vmatpush3.bf16.msra.mxu0 %v1415_v12 }
  0x84   :  { %1272 = vmatpush3.bf16.msra.mxu1 %v1416_v13  ;;  %1251 = vmatprep.subr.bf16.mxu0 %v1417_v14 }
  0x85   :  { %1273 = vmatprep.subr.bf16.mxu1 %v1418_v15 }
  0x87   :  { %1252 = vmatpush3.bf16.msra.mxu0 %v1419_v16  ;;  %v1445_v16 = vld [vmem:[#allocation8 + $0x30] sm:$0xff]  }
  0x88   :  { %1274 = vmatpush3.bf16.msra.mxu1 %v1420_v17  ;;  %1253 = vmatprep.subr.bf16.mxu0 %v1421_v18  ;;  %v1446_v17 = vld [vmem:[#allocation8 + $0x38] sm:$0xff]   ;;  %v1177_v18 = vld [vmem:[%s1736_s4] ss:$0 sm:$0xff] }
  0x89   :  { %1275 = vmatprep.subr.bf16.mxu1 %v1422_v19 }
  0x8b   :  { %1254 = vmatpush3.bf16.msra.mxu0 %v1423_v20 }
  0x8c   :  { %1276 = vmatpush3.bf16.msra.mxu1 %v1424_v21  ;;  %1301 = vmatprep.subr.bf16.mxu0 %v1574_v40 }
  0x8d   :  { %1321 = vmatprep.subr.bf16.mxu1 %v1574_v40 }
  0x8e   :  { %819 = vmatmul.mubr.bf16.vlgmr.msra.gmra.mrb[4].mxu0 %v183_v35 }
  0x8f   :  { %859 = vmatmul.mubr.bf16.vlgmr.msra.gmra.mrb[4].mxu1 %v185_v38  ;;  %1302 = vmatpush3.bf16.msra.mxu0 %v1431_v39 }
  0x90   :  { %1303 = vmatprep.subr.bf16.mxu0 %v1574_v40  ;;  %1317 = vmatprep.mubr.msk.bf16.mxu0 %vm1575_vm0, %v1574_v40 }
  0x91   :  { %1337 = vmatprep.mubr.msk.bf16.mxu1 %vm1575_vm0, %v1574_v40  ;;  %1322 = vmatpush3.bf16.msra.mxu1 %v1439_v47 }
  0x92   :  { %1323 = vmatprep.subr.bf16.mxu1 %v1574_v40 }
  0x93   :  { %1304 = vmatpush3.bf16.msra.mxu0 %v1432_v37 }
  0x94   :  { %1305 = vmatprep.subr.bf16.mxu0 %v1574_v40 }
  0x95   :  { %1324 = vmatpush3.bf16.msra.mxu1 %v1440_v48 }
  0x96   :  { %1325 = vmatprep.subr.bf16.mxu1 %v1574_v40 }
  0x97   :  { %1306 = vmatpush3.bf16.msra.mxu0 %v1433_v41 }
  0x98   :  { %1307 = vmatprep.subr.bf16.mxu0 %v1574_v40 }
  0x99   :  { %1326 = vmatpush3.bf16.msra.mxu1 %v1441_v49 }
  0x9a   :  { %1327 = vmatprep.subr.bf16.mxu1 %v1574_v40 }
  0x9b   :  { %1308 = vmatpush3.bf16.msra.mxu0 %v1434_v42 }
  0x9c   :  { %1309 = vmatprep.subr.bf16.mxu0 %v1574_v40 }
  0x9d   :  { %1328 = vmatpush3.bf16.msra.mxu1 %v1442_v50 }
  0x9e   :  { %1329 = vmatprep.subr.bf16.mxu1 %v1574_v40 }
  0x9f   :  { %1310 = vmatpush3.bf16.msra.mxu0 %v1435_v43 }
  0xa0   :  { %1311 = vmatprep.subr.bf16.mxu0 %v1574_v40 }
  0xa1   :  { %1330 = vmatpush3.bf16.msra.mxu1 %v1443_v51 }
  0xa2   :  { %1331 = vmatprep.subr.bf16.mxu1 %v1574_v40 }
  0xa3   :  { %1312 = vmatpush3.bf16.msra.mxu0 %v1436_v44 }
  0xa4   :  { %1313 = vmatprep.subr.bf16.mxu0 %v1574_v40 }
  0xa5   :  { %1332 = vmatpush3.bf16.msra.mxu1 %v1444_v52 }
  0xa6   :  { %1333 = vmatprep.subr.bf16.mxu1 %v1574_v40 }
  0xa7   :  { %1314 = vmatpush3.bf16.msra.mxu0 %v1437_v45 }
  0xa8   :  { %1315 = vmatprep.subr.bf16.mxu0 %v1574_v40 }
  0xa9   :  { %1334 = vmatpush3.bf16.msra.mxu1 %v1445_v16 }
  0xaa   :  { %1335 = vmatprep.subr.bf16.mxu1 %v1574_v40 }
  0xab   :  { %1316 = vmatpush3.bf16.msra.mxu0 %v1438_v46 }
  0xad   :  { %1336 = vmatpush3.bf16.msra.mxu1 %v1446_v17 }
 0x141   :  { %v1211_v53 = vpop.f32.mrb[0].mxu0 }
 0x142   :  { %v1233_v54 = vpop.f32.mrb[0].mxu1  ;;  %v1212_v56 = vpop.f32.mrb[1].mxu0 }
 0x143   :  { %v1213_v57 = vadd.f32 %v1212_v56, %v1211_v53  ;;  %v1234_v58 = vpop.f32.mrb[1].mxu1  ;;  %v1214_v59 = vpop.f32.mrb[2].mxu0 }
 0x144   :  { %v1235_v60 = vadd.f32 %v1234_v58, %v1233_v54  ;;  %v1236_v61 = vpop.f32.mrb[2].mxu1  ;;  %v1215_v62 = vpop.f32.mrb[3].mxu0 }
 0x145   :  { %v741_v63 = vadd.f32 %v1213_v57, %v1112_v55  ;;  %v1237_v0 = vpop.f32.mrb[3].mxu1 }
 0x147   :  { %v781_v1 = vadd.f32 %v1235_v60, %v741_v63 }
 0x161   :  { %v1255_v2 = vpop.f32.mrb[4].mxu0 }
 0x162   :  { %v1277_v3 = vpop.f32.mrb[4].mxu1  ;;  %v1256_v4 = vpop.f32.mrb[5].mxu0 }
 0x163   :  { %v1257_v5 = vadd.f32 %v1256_v4, %v1255_v2  ;;  %v1278_v6 = vpop.f32.mrb[5].mxu1  ;;  %v1258_v7 = vpop.f32.mrb[6].mxu0 }
 0x164   :  { %v1279_v8 = vadd.f32 %v1278_v6, %v1277_v3  ;;  %v1280_v9 = vpop.f32.mrb[6].mxu1  ;;  %v1259_v10 = vpop.f32.mrb[7].mxu0 }
 0x165   :  { %v821_v11 = vadd.f32 %v1257_v5, %v781_v1  ;;  %v1281_v12 = vpop.f32.mrb[7].mxu1 }
 0x167   :  { %v861_v13 = vadd.f32 %v1279_v8, %v821_v11 }
 0x169   :  { %v866_v14 = vmax.f32 %v861_v13, 0.0 }
 0x16b   :  { %v867_v15 = vpack.c.bf16 %v866_v14, %v866_v14 }
 0x16d   :  { %1318 = vmatmul.mubr.bf16.vlgmr.msra.gmra.mrb[8].mxu0 %v867_v15 }
 0x240   :  { %v973_v19 = vpop.f32.mrb[8].mxu0 }
 0x241   :  { %v974_v20 = vadd.f32 %v1177_v18, %v973_v19  ;;  %v1319_v21 = vpop.f32.mrb[9].mxu0 }
 0x242   :  { %v976_v22 = vpop.f32.mrb[10].mxu0 }
 0x243   :  { %v979_v23 = vmax.f32 %v974_v20, 0.0  ;;  %v1320_v24 = vpop.f32.mrb[11].mxu0 }
 0x245   :  { %v980_v25 = vpack.c.bf16 %v979_v23, %v979_v23 }
 0x247   :  { %1338 = vmatmul.mubr.bf16.vlgmr.msra.gmra.mrb[8].mxu1 %v980_v25 }
 0x31a   :  { %v1086_v27 = vpop.f32.mrb[8].mxu1 }
 0x31b   :  { %v1087_v28 = vadd.f32 %v1186_v26, %v1086_v27  ;;  %v1339_v29 = vpop.f32.mrb[9].mxu1 }
 0x31c   :  { %v1089_v30 = vpop.f32.mrb[10].mxu1 }
 0x31d   :  { %1092 = vst [vmem:[#allocation10] sm:$0xff] %v1087_v28  ;;  %v1340_v31 = vpop.f32.mrb[11].mxu1 }
 0x31e   :  { %1097 = vsyncadd [#allocation4], 96  ;;  %s1576_s4 = smov [#allocation10]  }
 0x31f   :  { %s1098_s8 = sshll.u32 %s1576_s4, 4  ;;  %s1099_s8 = int_to_ptr.vmem [resolvable:$true] %s1098_s8 }
 0x320   :  { %s1535_s9 = scalar_lea.vmem %s1099_s8, 32  ;;  %s1539_s10 = scalar_lea.vmem %s1099_s8, 128 }
 0x321   :  { %p1536_p4 = scmp.ne.s32.totalorder %s1099_s8, %s1535_s9  ;;  %p1540_p5 = scmp.lt.s32.totalorder %s1099_s8, %s1099_s8 }
 0x322   :  { %p1541_p6 = scmp.lt.s32.totalorder %s1539_s10, %s1535_s9 }
 0x324   :  { %p1542_p7 = por %p1541_p6, %p1540_p5 }
 0x326   :  { %p1543_p8 = pnand %p1542_p7, %p1536_p4 }
 0x328   :  { %1546 = shalt.err (!%p1543_p8)
}
 0x329   :  { %s1547_s14 = scalar_lea.hbm %s1739_s7, 32 }
 0x32a   :  { %p1548_p9 = scmp.ne.s32.totalorder %s1739_s7, %s1547_s14  ;;  %p1551_p10 = scmp.lt.u32.totalorder %s1547_s14, %s1739_s7 }
 0x32c   :  { %p1553_p11 = pnand %p1551_p10, %p1548_p9 }
 0x32e   :  { %1556 = shalt.err (!%p1553_p11)
}
 0x32f   :  { %s1577_s0 = smov 32   ;;  %s1578_s16 = smov 2  }
 0x330   :  { %1104 = dma.vmem_to_hbm [thread:$0]  %s1099_s8, 32, %s1739_s7, [#allocation4], %s1577_s0, %s1577_s0, %s1578_s16  }
 0x331   :  { %1563 = dma.done.wait [#allocation4], 128  }
 0x332   :  { %1564 = vsyncadd [#allocation4], 4294967168 }
 0x333   :  { %1108 = vsyncpa [#allocation3], 1 }
 0x334   :  { %1109 = vsyncpa [#allocation6], 1 }
 0x335   :  { %1110 = vsyncpa [#allocation9], 1 }
 0x336   :  { %1111 = vsyncpa [#allocation4], 1 }

</bundles_post_ra>
